<compile_context>
chip_gen: v7x
topology: tpu7x:2x2x1
jax: 0.10.0
libtpu: 0.0.40
codegen_flags: <defaults>
</compile_context>

<pallas_src>
import functools

import jax
import jax.numpy as jnp
from jax.experimental import pallas as pl
from jax.experimental.pallas import tpu as pltpu


def _sdpa_kernel(*refs, scale, scale_in_exp, has_mask, return_attn, compute_dtype):
    idx = 0
    if has_mask:
        mask_ref = refs[idx]
        idx += 1
    q_ref, k_ref, v_ref, o_ref = refs[idx:idx + 4]
    a_ref = refs[idx + 4] if return_attn else None

    q = q_ref[...]  # (G, Lq, Dk)
    k = k_ref[...]  # (G, Lk, Dk)
    v = v_ref[...]  # (G, Lk, Dv)

    if not scale_in_exp:
        # Scale the smaller (Lq, Dk) operand.
        q = q * jnp.asarray(scale, q.dtype)
    if compute_dtype is not None:
        q = q.astype(compute_dtype)
        k = k.astype(compute_dtype)

    # Batched q @ k^T contracting the last dims directly (no explicit transpose).
    s = jnp.einsum("gqd,gkd->gqk", q, k, preferred_element_type=jnp.float32)

    if has_mask:
        keep = mask_ref[...] != 0  # direct int8 compare; broadcasts over G if needed
        s = jnp.where(keep, s, jnp.float32(-1e9))

    m = jnp.max(s, axis=-1, keepdims=True)
    z = s - m
    if scale_in_exp:
        # softmax(scale * s) == exp(scale * (s - max(s))) / sum   (scale > 0)
        z = z * jnp.float32(scale)
    e = jnp.exp(z)
    l = jnp.sum(e, axis=-1, keepdims=True)
    attn = e * pl.reciprocal(l, approx=True)  # EUP reciprocal instead of VPU divide

    # Second matmul in the value dtype (bf16 path on v6e/v7x), f32 accumulation.
    out = jnp.einsum("gqk,gkd->gqd", attn.astype(v.dtype), v,
                     preferred_element_type=jnp.float32)

    o_ref[...] = out.astype(o_ref.dtype)
    if a_ref is not None:
        a_ref[...] = attn.astype(a_ref.dtype)


def _vmem_capacity_bytes():
    """Physical VMEM per TensorCore; conservative fallback if the query fails."""
    try:
        return int(pltpu.get_tpu_info().vmem_capacity_bytes)
    except Exception:
        return 64 * 2**20  # v7x-sized fallback: never over-budgets on any generation


def _pick_group_size(divisor_of, total_units, per_unit_bytes, budget_bytes):
    """Largest divisor of `divisor_of` whose block fits the VMEM budget.

    Prefers >= 2 grid steps (ideally an even count) over one giant block so the two
    TensorCores on v7x both get work from the "parallel" grid axis.
    """
    divisors = [d for d in range(1, divisor_of + 1) if divisor_of % d == 0]
    fitting = [d for d in divisors if d * per_unit_bytes <= budget_bytes] or [1]

    def rank(d):
        n_blocks = total_units // d
        return (n_blocks >= 2, n_blocks % 2 == 0, d)

    return max(fitting, key=rank)


def scaled_dot_product_attention(q, k, v, temperature, mask=None, *,
                                 return_attn=True, allow_bf16_matmul=False):
    """Pallas implementation of ScaledDotProductAttention.forward.

    q: (B, H, Lq, Dk), k: (B, H, Lk, Dk), v: (B, H, Lk, Dv),
    mask: optional, broadcastable to (B, H, Lq, Lk).
    Returns (output, attn) if return_attn else output.
    """
    B, H, Lq, Dk = q.shape
    Lk = k.shape[2]
    Dv = v.shape[3]
    assert k.shape == (B, H, Lk, Dk)
    assert v.shape == (B, H, Lk, Dv)

    in_dtype = q.dtype
    isz = jnp.dtype(in_dtype).itemsize
    BH = B * H

    # Per-head VMEM footprint.  The factor 2 is the double-buffering of the pipelined
    # in/out blocks; f32 intermediates are single-buffered (live only inside the body).
    attn_out_elems = Lq * Lk if return_attn else 0
    per_head_bytes = (
        2 * (Lq * Dk + Lk * Dk + Lk * Dv + Lq * Dv + attn_out_elems) * isz
        + 2 * Lq * Lk            # int8 mask block (upper bound)
        + 3 * Lq * Lk * 4        # f32 scores / exp / attn
        + Lq * Dv * 4            # f32 accumulator
    )

    # Generation-aware budgeting: 32 MiB blocks on 128 MiB parts (v5e/v6e), 16 MiB on
    # 64 MiB parts (v7x); vmem_limit leaves 8 MiB headroom for Mosaic internal scratch.
    vmem_cap = _vmem_capacity_bytes()
    block_budget = min(32 * 2**20, vmem_cap // 4)

    mask_is_head_broadcast = False
    if mask is not None:
        mask = jnp.asarray(mask)
        if mask.ndim < 4:
            mask = mask.reshape((1,) * (4 - mask.ndim) + mask.shape)
        mask_is_head_broadcast = (mask.shape[1] == 1)

    # Head-group size per grid step.  The broadcast-mask path indexes the mask by batch
    # (i // hpg), so its groups must stay inside one batch element (G | H); otherwise
    # groups may span batch elements (G | B*H).
    group_domain = H if mask_is_head_broadcast else BH
    G = _pick_group_size(group_domain, BH, per_head_bytes, block_budget)
    n_blocks = BH // G
    hpg = H // G if mask_is_head_broadcast else 1

    # Fuse (B, H) into one leading axis -- free metadata reshape.
    q3 = q.reshape(BH, Lq, Dk)
    k3 = k.reshape(BH, Lk, Dk)
    v3 = v.reshape(BH, Lk, Dv)

    scale = 1.0 / float(temperature)
    scale_in_exp = (scale > 0.0) and (Dk > Lk)  # touch the cheaper tensor
    compute_dtype = (jnp.bfloat16
                     if (allow_bf16_matmul and in_dtype == jnp.float32) else None)

    qkv_specs = [
        pl.BlockSpec((G, Lq, Dk), lambda i: (i, 0, 0)),
        pl.BlockSpec((G, Lk, Dk), lambda i: (i, 0, 0)),
        pl.BlockSpec((G, Lk, Dv), lambda i: (i, 0, 0)),
    ]

    if return_attn:
        out_shape = (jax.ShapeDtypeStruct((BH, Lq, Dv), in_dtype),
                     jax.ShapeDtypeStruct((BH, Lq, Lk), in_dtype))
        out_specs = (pl.BlockSpec((G, Lq, Dv), lambda i: (i, 0, 0)),
                     pl.BlockSpec((G, Lq, Lk), lambda i: (i, 0, 0)))
    else:
        out_shape = jax.ShapeDtypeStruct((BH, Lq, Dv), in_dtype)
        out_specs = pl.BlockSpec((G, Lq, Dv), lambda i: (i, 0, 0))

    block_bytes = G * per_head_bytes  # already includes the 2x pipeline buffering
    vmem_limit = int(min(vmem_cap - 8 * 2**20,
                         max(32 * 2**20, block_bytes + 4 * 2**20)))
    cparams = pltpu.CompilerParams(
        dimension_semantics=("parallel",),
        vmem_limit_bytes=vmem_limit,
    )

    kernel = functools.partial(
        _sdpa_kernel, scale=scale, scale_in_exp=scale_in_exp,
        has_mask=mask is not None, return_attn=return_attn,
        compute_dtype=compute_dtype)

    if mask is None:
        in_specs = qkv_specs
        args = (q3, k3, v3)
    else:
        if mask_is_head_broadcast:
            # Keep the head axis un-broadcast in HBM; the kernel broadcasts it for
            # free.  int8 cuts DMA traffic vs int32/bool32.
            mask_arr = jnp.broadcast_to(mask, (B, 1, Lq, Lk)).reshape(B, Lq, Lk)
            mask_arr = mask_arr.astype(jnp.int8)
            mask_spec = pl.BlockSpec((1, Lq, Lk), lambda i: (i // hpg, 0, 0))
        else:
            mask_arr = jnp.broadcast_to(mask, (B, H, Lq, Lk)).reshape(BH, Lq, Lk)
            mask_arr = mask_arr.astype(jnp.int8)
            mask_spec = pl.BlockSpec((G, Lq, Lk), lambda i: (i, 0, 0))
        in_specs = [mask_spec] + qkv_specs
        args = (mask_arr, q3, k3, v3)

    result = pl.pallas_call(
        kernel,
        out_shape=out_shape,
        grid=(n_blocks,),
        in_specs=in_specs,
        out_specs=out_specs,
        compiler_params=cparams,
    )(*args)

    if return_attn:
        out3, attn3 = result
        return out3.reshape(B, H, Lq, Dv), attn3.reshape(B, H, Lq, Lk)
    return result.reshape(B, H, Lq, Dv)


def _reference(q, k, v, temperature, mask=None):
    attn = jnp.matmul(q / temperature, jnp.swapaxes(k, 2, 3))
    if mask is not None:
        attn = jnp.where(mask == 0, -1e9, attn)
    attn = jax.nn.softmax(attn, axis=-1)
    out = jnp.matmul(attn, v)
    return out, attn


if __name__ == "__main__":
    key = jax.random.PRNGKey(0)
    kq, kk, kv, km = jax.random.split(key, 4)

    B, H, Lq, Lk, Dk, Dv = 2, 4, 8, 16, 32, 32
    temperature = float(Dk) ** 0.5

    q = jax.random.normal(kq, (B, H, Lq, Dk), dtype=jnp.float32)
    k = jax.random.normal(kk, (B, H, Lk, Dk), dtype=jnp.float32)
    v = jax.random.normal(kv, (B, H, Lk, Dv), dtype=jnp.float32)

    # Tolerance accounts for the EUP approximate reciprocal in the softmax normalization.
    tol = dict(atol=5e-3, rtol=5e-3)

    # --- no-mask path ---
    out, attn = scaled_dot_product_attention(q, k, v, temperature)
    jax.block_until_ready((out, attn))
    out_ref, attn_ref = _reference(q, k, v, temperature)
    assert out.shape == out_ref.shape and attn.shape == attn_ref.shape
    assert jnp.allclose(out, out_ref, **tol), float(jnp.max(jnp.abs(out - out_ref)))
    assert jnp.allclose(attn, attn_ref, **tol), float(jnp.max(jnp.abs(attn - attn_ref)))

    # --- masked path (mask broadcast over heads) ---
    mask = (jax.random.uniform(km, (B, 1, Lq, Lk)) > 0.3).astype(jnp.int32)
    out_m, attn_m = scaled_dot_product_attention(q, k, v, temperature, mask=mask)
    jax.block_until_ready((out_m, attn_m))
    out_mr, attn_mr = _reference(q, k, v, temperature, mask=mask)
    assert jnp.allclose(out_m, out_mr, **tol), float(jnp.max(jnp.abs(out_m - out_mr)))
    assert jnp.allclose(attn_m, attn_mr, **tol), float(jnp.max(jnp.abs(attn_m - attn_mr)))

    # --- output-only fast path (drops the attn HBM writeback) ---
    out_fast = scaled_dot_product_attention(q, k, v, temperature, mask=mask,
                                            return_attn=False)
    jax.block_until_ready(out_fast)
    assert jnp.allclose(out_fast, out_mr, **tol), \
        float(jnp.max(jnp.abs(out_fast - out_mr)))

    print("KERNEL_OK")
</pallas_src>

<mosaic_0001>
module attributes {stable_mosaic.version = 11 : i64} {
  func.func @_sdpa_kernel(%arg0: i32, %arg1: memref<4x8x32xf32, #tpu.memory_space<vmem>>, %arg2: memref<4x16x32xf32, #tpu.memory_space<vmem>>, %arg3: memref<4x16x32xf32, #tpu.memory_space<vmem>>, %arg4: memref<4x8x32xf32, #tpu.memory_space<vmem>>, %arg5: memref<4x8x16xf32, #tpu.memory_space<vmem>>) attributes {dimension_semantics = [#tpu.dimension_semantics<parallel>], iteration_bounds = array<i64: 2>, scalar_prefetch = 0 : i64, scratch_operands = 0 : i64, tpu.core_type = #tpu.core_type<tc>, window_params = [{transform_indices = @transform_0, window_bounds = array<i64: 4, 8, 32>}, {transform_indices = @transform_1, window_bounds = array<i64: 4, 16, 32>}, {transform_indices = @transform_2, window_bounds = array<i64: 4, 16, 32>}, {transform_indices = @transform_3, window_bounds = array<i64: 4, 8, 32>}, {transform_indices = @transform_4, window_bounds = array<i64: 4, 8, 16>}]} {
    %c0 = arith.constant 0 : index
    %c0_0 = arith.constant 0 : index
    %c0_1 = arith.constant 0 : index
    %0 = vector.load %arg1[%c0, %c0_0, %c0_1] : memref<4x8x32xf32, #tpu.memory_space<vmem>>, vector<4x8x32xf32>
    %c0_2 = arith.constant 0 : index
    %c0_3 = arith.constant 0 : index
    %c0_4 = arith.constant 0 : index
    %1 = vector.load %arg2[%c0_2, %c0_3, %c0_4] : memref<4x16x32xf32, #tpu.memory_space<vmem>>, vector<4x16x32xf32>
    %c0_5 = arith.constant 0 : index
    %c0_6 = arith.constant 0 : index
    %c0_7 = arith.constant 0 : index
    %2 = vector.load %arg3[%c0_5, %c0_6, %c0_7] : memref<4x16x32xf32, #tpu.memory_space<vmem>>, vector<4x16x32xf32>
    "tpu.trace_start"() <{level = 10 : i32, message = "gqd,gkd->gqk"}> : () -> ()
    %cst = arith.constant dense<0.000000e+00> : vector<4x8x16xf32>
    %3 = tpu.matmul %0, %1, %cst {dimension_numbers = #tpu.dot_dimension_numbers<[2], [2], [1], [1], [0, 0, 0, 1, 1, 1], [0], [0]>} : vector<4x8x32xf32>, vector<4x16x32xf32>, vector<4x8x16xf32> -> vector<4x8x16xf32>
    "tpu.trace_stop"() : () -> ()
    %cst_8 = arith.constant dense<0xFF800000> : vector<4x8xf32>
    %4 = vector.multi_reduction <maximumf>, %3, %cst_8 [2] : vector<4x8x16xf32> to vector<4x8xf32>
    %5 = vector.shape_cast %4 : vector<4x8xf32> to vector<4x8x1xf32>
    %6 = vector.broadcast %5 : vector<4x8x1xf32> to vector<4x8x16xf32>
    %7 = arith.subf %3, %6 : vector<4x8x16xf32>
    %cst_9 = arith.constant 0.176776692 : f32
    %8 = vector.broadcast %cst_9 : f32 to vector<4x8x16xf32>
    %9 = arith.mulf %7, %8 : vector<4x8x16xf32>
    %10 = math.exp %9 : vector<4x8x16xf32>
    %cst_10 = arith.constant dense<0.000000e+00> : vector<4x8xf32>
    %11 = vector.multi_reduction <add>, %10, %cst_10 [2] : vector<4x8x16xf32> to vector<4x8xf32>
    %12 = vector.shape_cast %11 : vector<4x8xf32> to vector<4x8x1xf32>
    %13 = tpu.reciprocal %12 {approx = true} : vector<4x8x1xf32> -> vector<4x8x1xf32>
    %14 = vector.broadcast %13 : vector<4x8x1xf32> to vector<4x8x16xf32>
    %15 = arith.mulf %10, %14 : vector<4x8x16xf32>
    "tpu.trace_start"() <{level = 10 : i32, message = "gqk,gkd->gqd"}> : () -> ()
    %cst_11 = arith.constant dense<0.000000e+00> : vector<4x8x32xf32>
    %16 = tpu.matmul %15, %2, %cst_11 {dimension_numbers = #tpu.dot_dimension_numbers<[2], [1], [1], [2], [0, 0, 0, 1, 1, 2], [0], [0]>} : vector<4x8x16xf32>, vector<4x16x32xf32>, vector<4x8x32xf32> -> vector<4x8x32xf32>
    "tpu.trace_stop"() : () -> ()
    %c0_12 = arith.constant 0 : index
    %c0_13 = arith.constant 0 : index
    %c0_14 = arith.constant 0 : index
    %17 = vector.load %arg4[%c0_12, %c0_13, %c0_14] : memref<4x8x32xf32, #tpu.memory_space<vmem>>, vector<4x8x32xf32>
    tpu.vector_store %arg4[%c0_12, %c0_13, %c0_14], %16 {strides = array<i32>} : memref<4x8x32xf32, #tpu.memory_space<vmem>>, vector<4x8x32xf32>,
    %c0_15 = arith.constant 0 : index
    %c0_16 = arith.constant 0 : index
    %c0_17 = arith.constant 0 : index
    %18 = vector.load %arg5[%c0_15, %c0_16, %c0_17] : memref<4x8x16xf32, #tpu.memory_space<vmem>>, vector<4x8x16xf32>
    tpu.vector_store %arg5[%c0_15, %c0_16, %c0_17], %15 {strides = array<i32>} : memref<4x8x16xf32, #tpu.memory_space<vmem>>, vector<4x8x16xf32>,
    return
  }
  func.func @transform_0(%arg0: i32) -> (i32, i32, i32) {
    %c0_i32 = arith.constant 0 : i32
    %c0_i32_0 = arith.constant 0 : i32
    %c0_i32_1 = arith.constant 0 : i32
    return %arg0, %c0_i32, %c0_i32_0 : i32, i32, i32
  }
  func.func @transform_1(%arg0: i32) -> (i32, i32, i32) {
    %c0_i32 = arith.constant 0 : i32
    %c0_i32_0 = arith.constant 0 : i32
    %c0_i32_1 = arith.constant 0 : i32
    return %arg0, %c0_i32, %c0_i32_0 : i32, i32, i32
  }
  func.func @transform_2(%arg0: i32) -> (i32, i32, i32) {
    %c0_i32 = arith.constant 0 : i32
    %c0_i32_0 = arith.constant 0 : i32
    %c0_i32_1 = arith.constant 0 : i32
    return %arg0, %c0_i32, %c0_i32_0 : i32, i32, i32
  }
  func.func @transform_3(%arg0: i32) -> (i32, i32, i32) {
    %c0_i32 = arith.constant 0 : i32
    %c0_i32_0 = arith.constant 0 : i32
    %c0_i32_1 = arith.constant 0 : i32
    return %arg0, %c0_i32, %c0_i32_0 : i32, i32, i32
  }
  func.func @transform_4(%arg0: i32) -> (i32, i32, i32) {
    %c0_i32 = arith.constant 0 : i32
    %c0_i32_0 = arith.constant 0 : i32
    %c0_i32_1 = arith.constant 0 : i32
    return %arg0, %c0_i32, %c0_i32_0 : i32, i32, i32
  }
}

</mosaic_0001>

<bundles_post_ra>
// kernel: tpu_custom_call.1
= control target key start
LH: loop header
LB: loop body
LE: loop exit
PB: predicated region body
PF: predicated region fallthrough
CT: control target
= control target key end

     0   :  { %s2025_s0 = inlined_call_operand.hbm [shape: f32[8,8,32], index: 0, kind: input, shape index: {}]   ;;  %s2026_s1 = inlined_call_operand.hbm [shape: f32[8,16,32], index: 1, kind: input, shape index: {}]   ;;  %s2027_s2 = inlined_call_operand.hbm [shape: f32[8,16,32], index: 2, kind: input, shape index: {}]   ;;  %s2028_s3 = inlined_call_operand.hbm [shape: f32[8,8,32], index: 3, kind: output, shape index: {0}]   ;;  %s2029_s4 = inlined_call_operand.hbm [shape: f32[8,8,16], index: 4, kind: output, shape index: {1}]  }
   0x1   :  { %2036 = sst [smem:[#allocation16_spill]] %s2026_s1 }
   0x2   :  { %10 = vsyncpa [#allocation3], 0 }
   0x3   :  { %12 = vsyncpa [#allocation3 + $0x1], 0 }
   0x4   :  { %13 = vsyncpa [#allocation6], 0 }
   0x5   :  { %15 = vsyncpa [#allocation6 + $0x1], 0 }
   0x6   :  { %16 = vsyncpa [#allocation4], 0 }
   0x7   :  { %18 = vsyncpa [#allocation4 + $0x1], 0 }
   0x8   :  { %19 = vsyncpa [#allocation10], 0 }
   0x9   :  { %21 = vsyncpa [#allocation10 + $0x1], 0  ;;  %s1654_s15 = smov 0   ;;  %s1656_s16 = smov 0  }
   0xa   :  { %s1658_s17 = smov 0   ;;  %s1660_s18 = smov 0  }
   0xb LB: > { %s1675_s19 = sadd.s32 4294967295, %s1615_s18   ;;  %s1180_s20 = sadd.s32 4294967294, %s1615_s18   ;;  %s1615_s18 = sphi %s1660_s18, %s2058_s18   ;;  %s1611_s17 = sphi %s1658_s17, %s2057_s17   ;;  %s1607_s16 = sphi %s1656_s16, %s2056_s16   ;;  %s1603_s15 = sphi %s1654_s15, %s2055_s15  }
   0xc   : > { %s1679_s21 = sadd.s32 1, %s1615_s18   ;;  %s34_s22 = sadd.s32 1, %s1611_s17 }
   0xd   : > { %s31_s23 = ssub.s32 %s1615_s18, %s1679_s21  ;;  %p41_p0 = scmp.ne.s32.totalorder %s1611_s17, %s1607_s16 }
   0xe   : > { %p32_p1 = scmp.eq.s32.totalorder %s31_s23, 0  ;;  %p42_p2 = scmp.eq.s32.totalorder %s1615_s18, 0 }
   0xf   : > { %p47_p3 = scmp.ne.s32.totalorder %s1607_s16, %s1603_s15  ;;  %p48_p4 = scmp.eq.s32.totalorder %s1675_s19, 0 }
  0x10   : > { %s1691_s24 = scalar_select %p32_p1, %s1611_s17, %s34_s22  }
  0x11   : > { %p43_p5 = por %p42_p2, %p41_p0  ;;  %p1693_p6 = por %p48_p4, %p47_p3 }
  0x12   : > { %2037 = sst [smem:[#allocation15_spill]] %s1691_s24  ;;  %p123_p7 = scmp.eq.s32.totalorder %s1675_s19, 1 }
  0x13   : > { %s2038_s25 = scalar_select %p1693_p6, 1, 0 }
  0x14   : > { %p129_p8 = scmp.eq.s32.totalorder %s1180_s20, 1  ;;  %p1366_p10 = scmp.lt.s32.totalorder %s1615_s18, 2 }
  0x15   : > { %p1700_p11 = por %p123_p7, %p41_p0  ;;  %s1709_s28 = sand.u32 1, %s1611_s17  }
  0x16   : > { %p1704_p12 = por %p129_p8, %p47_p3  ;;  %p1711_p13 = pnand %p1366_p10, %p43_p5 }
  0x17   : > { %s2039_s26 = scalar_select %p1700_p11, 1, 0 }
  0x18   : > { %s2040_s27 = scalar_select %p1704_p12, 1, 0 }
  0x19   : > { %s196_s30 = sand.u32 1, %s1615_s18   ;;  %s1186_s5 = sshll.u32 %s1709_s28, 6 }
  0x1a   : > { %s1226_s6 = sshll.u32 %s1615_s18, 10  ;;  %s2042_s1 = sld [smem:[#allocation16_spill]] }
  0x1b   : > { %s200_s10 = scalar_lea.vmem [#allocation5], %s1186_s5  ;;  %s1729_s12 = scalar_lea.sflag [#allocation6], %s196_s30 }
  0x1c   : > { %s208_s11 = sshll.u32 %s200_s10, 4  ;;  %p1735_p1 = pneg %p1711_p13  ;;  %s1727_s11 = int_to_ptr.vmem [resolvable:$true] %s208_s11 }
  0x20   : > { %s1723_s9 = scalar_lea.hbm %s2042_s1, %s1226_s6  ;;  %s1428_s23 = scalar_lea.hbm %s2042_s1, 2048 }
  0x21   : > { %s1423_s13 = scalar_lea.hbm %s1723_s9, 1024  ;;  %p1429_p4 = scmp.lt.u32.totalorder %s1723_s9, %s2042_s1 }
  0x22   : > { %p1424_p0 = scmp.ne.s32.totalorder %s1723_s9, %s1423_s13  ;;  %p1430_p5 = scmp.lt.u32.totalorder %s1428_s23, %s1423_s13 }
  0x23   : > { %p1432_p8 = scmp.lt.u32.totalorder %s1423_s13, %s1723_s9 }
  0x24   : > { %p1426_p2 = pnand %p1735_p1, %p1424_p0  ;;  %p1431_p7 = por %p1430_p5, %p1429_p4 }
  0x26   : > { %p1427_p3 = pneg %p1426_p2  ;;  %p1433_p10 = por %p1432_p8, %p1431_p7 }
  0x28   : > { %p1434_p9 = pnand %p1433_p10, %p1427_p3 }
  0x2a   : > { %1437 = shalt.err (!%p1434_p9)
}
  0x2b   : > { %s1438_s30 = scalar_lea.vmem %s1727_s11, 1024  ;;  %s1617_s10 = smov [#allocation5]  }
  0x2c   : > { %p1439_p0 = scmp.ne.s32.totalorder %s1727_s11, %s1438_s30  ;;  %s1443_s20 = sshll.u32 %s1617_s10, 4  ;;  %s1444_s20 = int_to_ptr.vmem [resolvable:$false] %s1443_s20 }
  0x2d   : > { %s1445_s22 = scalar_lea.vmem %s1444_s20, 2048  ;;  %p1446_p11 = scmp.lt.s32.totalorder %s1727_s11, %s1444_s20 }
  0x2e   : > { %p1441_p2 = pnand %p1439_p0, %p1735_p1  ;;  %p1447_p6 = scmp.lt.s32.totalorder %s1445_s22, %s1438_s30 }
  0x30   : > { %p1442_p12 = pneg %p1441_p2  ;;  %p1448_p4 = por %p1447_p6, %p1446_p11 }
  0x32   : > { %p1449_p5 = pnand %p1448_p4, %p1442_p12 }
  0x34   : > { %1452 = shalt.err (!%p1449_p5)
}
  0x35   : > { %s2032_s13 = smov 128   ;;  %s2034_s23 = smov 8  }
  0x36   : > { %1355 = dma.hbm_to_vmem [thread:$0]  (!%p1711_p13), %s1723_s9, 1024, %s1727_s11, %s1729_s12, %s2032_s13, %s2032_s13, %s2034_s23  }
  0x37   : > { %s1767_s30 = scalar_lea.hbm %s2027_s2, %s1226_s6  ;;  %s222_s10 = scalar_lea.vmem [#allocation7], %s1186_s5 }
  0x38   : > { %s230_s20 = sshll.u32 %s222_s10, 4  ;;  %p1194_p6 = scmp.ge.s32.totalorder %s1615_s18, 1  ;;  %s1771_s20 = int_to_ptr.vmem [resolvable:$true] %s230_s20 }
  0x39   : > { %p238_p9 = scmp.lt.s32.totalorder %s1615_s18, 3  ;;  %s1183_s22 = sshll.u32 %s1709_s28, 5 }
  0x3a   : > { %s1224_s1 = sshll.u32 %s1615_s18, 9  ;;  %s179_s5 = scalar_lea.vmem [#allocation2], %s1183_s22 }
  0x3b   : > { %p1777_p11 = pnand %p1194_p6, %p238_p9  ;;  %s1784_s7 = scalar_lea.hbm %s2025_s0, %s1224_s1 }
  0x3c   : > { %s186_s6 = sshll.u32 %s179_s5, 4  ;;  %s176_s8 = scalar_lea.sflag [#allocation3], %s1709_s28  ;;  %s1786_s6 = int_to_ptr.vmem [resolvable:$true] %s186_s6 }
  0x3d   : > { %s2044_s24 = scalar_select %p1777_p11, 1, 0 }
  0x3e   : > { %s1453_s10 = scalar_lea.hbm %s1784_s7, 512  ;;  %s1458_s9 = scalar_lea.hbm %s2025_s0, 1024 }
  0x3f   : > { %p1454_p12 = scmp.ne.s32.totalorder %s1784_s7, %s1453_s10  ;;  %p1459_p8 = scmp.lt.u32.totalorder %s1784_s7, %s2025_s0 }
  0x40   : > { %p1460_p10 = scmp.lt.u32.totalorder %s1458_s9, %s1453_s10  ;;  %p1462_p2 = scmp.lt.u32.totalorder %s1453_s10, %s1784_s7 }
  0x41   : > { %p1456_p3 = pnand %p1454_p12, %p1735_p1 }
  0x42   : > { %p1461_p0 = por %p1460_p10, %p1459_p8 }
  0x43   : > { %p1457_p7 = pneg %p1456_p3 }
  0x44   : > { %p1463_p4 = por %p1462_p2, %p1461_p0 }
  0x46   : > { %p1464_p5 = pnand %p1463_p4, %p1457_p7 }
  0x48   : > { %1467 = shalt.err (!%p1464_p5)
}
  0x49   : > { %s1468_s22 = scalar_lea.vmem %s1786_s6, 512  ;;  %s1620_s13 = smov [#allocation2]  }
  0x4a   : > { %p1469_p6 = scmp.ne.s32.totalorder %s1786_s6, %s1468_s22  ;;  %s1473_s23 = sshll.u32 %s1620_s13, 4  ;;  %s1474_s23 = int_to_ptr.vmem [resolvable:$false] %s1473_s23 }
  0x4b   : > { %s1475_s5 = scalar_lea.vmem %s1474_s23, 1024  ;;  %p1476_p3 = scmp.lt.s32.totalorder %s1786_s6, %s1474_s23 }
  0x4c   : > { %p1471_p9 = pnand %p1469_p6, %p1735_p1  ;;  %p1477_p11 = scmp.lt.s32.totalorder %s1475_s5, %s1468_s22 }
  0x4e   : > { %p1472_p12 = pneg %p1471_p9  ;;  %p1478_p8 = por %p1477_p11, %p1476_p3 }
  0x50   : > { %p1479_p10 = pnand %p1478_p8, %p1472_p12 }
  0x52   : > { %1482 = shalt.err (!%p1479_p10)
}
  0x53   : > { %s2045_s10 = smov 8   ;;  %s2046_s9 = smov 128  }
  0x54   : > { %1352 = dma.hbm_to_vmem [thread:$0]  (!%p1711_p13), %s1784_s7, 512, %s1786_s6, %s176_s8, %s2046_s9, %s2046_s9, %s2045_s10  }
  0x55   : > { %s1483_s1 = scalar_lea.hbm %s1767_s30, 1024  ;;  %s1488_s13 = scalar_lea.hbm %s2027_s2, 2048 }
  0x56   : > { %p1484_p7 = scmp.ne.s32.totalorder %s1767_s30, %s1483_s1  ;;  %p1489_p2 = scmp.lt.u32.totalorder %s1767_s30, %s2027_s2 }
  0x57   : > { %p1490_p4 = scmp.lt.u32.totalorder %s1488_s13, %s1483_s1  ;;  %p1492_p6 = scmp.lt.u32.totalorder %s1483_s1, %s1767_s30 }
  0x58   : > { %p1486_p11 = pnand %p1484_p7, %p1735_p1 }
  0x59   : > { %p1491_p5 = por %p1490_p4, %p1489_p2 }
  0x5a   : > { %p1487_p0 = pneg %p1486_p11 }
  0x5b   : > { %p1493_p9 = por %p1492_p6, %p1491_p5 }
  0x5d   : > { %p1494_p12 = pnand %p1493_p9, %p1487_p0 }
  0x5f   : > { %1497 = shalt.err (!%p1494_p12)
}
  0x60   : > { %s1498_s28 = scalar_lea.vmem %s1771_s20, 1024  ;;  %s1621_s7 = smov [#allocation7]  }
  0x61   : > { %p1499_p3 = scmp.ne.s32.totalorder %s1771_s20, %s1498_s28  ;;  %s1503_s6 = sshll.u32 %s1621_s7, 4  ;;  %s1504_s6 = int_to_ptr.vmem [resolvable:$false] %s1503_s6 }
  0x62   : > { %s1505_s8 = scalar_lea.vmem %s1504_s6, 2048  ;;  %p1506_p7 = scmp.lt.s32.totalorder %s1771_s20, %s1504_s6 }
  0x63   : > { %p1501_p8 = pnand %p1499_p3, %p1735_p1  ;;  %p1507_p11 = scmp.lt.s32.totalorder %s1505_s8, %s1498_s28 }
  0x65   : > { %p1502_p10 = pneg %p1501_p8  ;;  %p1508_p2 = por %p1507_p11, %p1506_p7 }
  0x67   : > { %p1509_p4 = pnand %p1508_p2, %p1502_p10 }
  0x69   : > { %1512 = shalt.err (!%p1509_p4)
}
  0x6a   : > { %1358 = dma.hbm_to_vmem [thread:$0]  (!%p1711_p13), %s1767_s30, 1024, %s1771_s20, %s1729_s12, %s2046_s9, %s2046_s9, %s2045_s10  }
  0x6b   : > { %p2047_p1 = scmp.ne.s32.totalorder %s2044_s24, 0 }
  0x6c   : > { %s1843_s14 = sand.u32 (!%p2047_p1), 1, %s1607_s16   ;;  %p2048_p0 = scmp.ne.s32.totalorder (!%p2047_p1), %s2038_s25, 0 }
  0x6d   : > { %242 = sbr.rel (%p2047_p1) target bundleno = 897 (0x381), region = 32  ;;  %s1846_s1 = sshll.u32 (!%p2047_p1), %s1843_s14, 5 }
  0x6e   : > { %s245_s29 = scalar_lea.sflag (!%p2047_p1), [#allocation3], %s1843_s14  ;;  %s1850_s11 = scalar_lea.vmem (!%p2047_p1), [#allocation2], %s1846_s1 }
  0x74   : > { %1586 = dma.done.wait (%p2048_p0), %s245_s29, 512  }
  0x75   : > { %1588 = vsyncadd (%p2048_p0), %s245_s29, 4294966784  ;;  %s253_s24 = sand.u32 1, %s1675_s19   ;;  %s1196_s12 = sshll.u32 %s1843_s14, 6 }
  0x76   : > { %s254_s30 = scalar_lea.sflag [#allocation6], %s253_s24  ;;  %s257_s20 = scalar_lea.vmem [#allocation5], %s1196_s12 }
  0x77   : > { %1590 = dma.done.wait (%p2048_p0), %s254_s30, 2048  }
  0x78   : > { %1592 = vsyncadd (%p2048_p0), %s254_s30, 4294965248  ;;  %v1622_v0 = vmov 0.0|0.0   ;;  %vm1623_vm0 = vmmov 0   ;;  %v1624_v1 = vmov 0.0   ;;  %vm331_vm1 = vcmask 261120   ;;  %v315_v3 = vld [vmem:[%s257_s20] sm:$0xff] }
  0x79   : > { %1311 = vmatprep.subr.bf16.mxu0 %v1622_v0  ;;  %1315 = vmatprep.subr.bf16.mxu1 %v1622_v0  ;;  %vm1872_vm2 = vmpackc.low %vm331_vm1, %vm331_vm1  ;;  %v316_v4 = vld [vmem:[%s257_s20 + $0x8] sm:$0xff]  ;;  %v317_v5 = vld [vmem:[%s257_s20 + $0x10] sm:$0xff]  ;;  %vm648_vm3 = vcmask 130048   ;;  %s266_s25 = scalar_lea.vmem [#allocation7], %s1196_s12  ;;  %s305_s10 = scalar_lea.vmem [#allocation9], %s1846_s1 }
  0x7a   : > { %1259 = vmatprep.mubr.msk.f32.mxu0 %vm1623_vm0, %v1624_v1  ;;  %1266 = vmatprep.mubr.msk.f32.mxu1 %vm1623_vm0, %v1624_v1  ;;  %v1312_v6 = vpack.c.bf16 %v316_v4, %v315_v3  ;;  %v318_v7 = vld [vmem:[%s257_s20 + $0x18] sm:$0xff]  ;;  %v319_v9 = vld [vmem:[%s257_s20 + $0x20] sm:$0xff]  ;;  %v320_v10 = vld [vmem:[%s257_s20 + $0x28] sm:$0xff]  ;;  %s1229_s9 = sshll.u32 %s1675_s19, 9  ;;  %s1032_s22 = sshll.u32 %s305_s10, 4  ;;  %s1937_s22 = int_to_ptr.vmem [resolvable:$true] %s1032_s22 }
  0x7b   : > { %v1316_v8 = vpack.c.bf16 %v318_v7, %v317_v5  ;;  %v321_v11 = vld [vmem:[%s257_s20 + $0x30] sm:$0xff]  ;;  %v322_v12 = vld [vmem:[%s257_s20 + $0x38] sm:$0xff]  ;;  %v311_v13 = vld [vmem:[%s1850_s11] sm:$0xff]  ;;  %v1320_v14 = vpack.c.bf16 %v320_v10, %v319_v9  ;;  %s1935_s5 = scalar_lea.hbm %s2029_s4, %s1229_s9  ;;  %s1003_s28 = scalar_lea.sflag [#allocation10], %s1843_s14 }
  0x7c   : > { %1314 = vmatpush3.bf16.xpose.msk.msra.mxu0 %vm1872_vm2, %v1312_v6  ;;  %v312_v15 = vld [vmem:[%s1850_s11 + $0x8] sm:$0xff]  ;;  %v1324_v16 = vpack.c.bf16 %v322_v12, %v321_v11  ;;  %v313_v17 = vld [vmem:[%s1850_s11 + $0x10] sm:$0xff]  ;;  %v314_v18 = vld [vmem:[%s1850_s11 + $0x18] sm:$0xff]  ;;  %s1513_s7 = scalar_lea.vmem %s1937_s22, 512  ;;  %p2051_p5 = scmp.ne.s32.totalorder %s2039_s26, 0 }
  0x7d   : > { %1318 = vmatpush3.bf16.xpose.msk.msra.mxu1 %vm1872_vm2, %v1316_v8  ;;  %1319 = vmatprep.subr.bf16.mxu0 %v1622_v0  ;;  %v323_v55 = vld [vmem:[%s266_s25] sm:$0xff]  ;;  %v324_v56 = vld [vmem:[%s266_s25 + $0x8] sm:$0xff]  ;;  %v325_v58 = vld [vmem:[%s266_s25 + $0x10] sm:$0xff]  ;;  %p1514_p13 = scmp.ne.s32.totalorder %s1937_s22, %s1513_s7  ;;  %s1625_s6 = smov [#allocation9]  }
  0x7e   : > { %1323 = vmatprep.subr.bf16.mxu1 %v1622_v0  ;;  %v1328_v57 = vpack.c.bf16 %v324_v56, %v323_v55  ;;  %v326_v59 = vld [vmem:[%s266_s25 + $0x18] sm:$0xff]  ;;  %v327_v2 = vld [vmem:[%s266_s25 + $0x20] sm:$0xff]  ;;  %v328_v3 = vld [vmem:[%s266_s25 + $0x28] sm:$0xff]  ;;  %s1517_s8 = sshll.u32 %s1625_s6, 4  ;;  %s1518_s8 = int_to_ptr.vmem [resolvable:$false] %s1517_s8 }
  0x7f   : > { %v1331_v60 = vpack.c.bf16 %v326_v59, %v325_v58  ;;  %v1334_v5 = vpack.c.bf16 %v328_v3, %v327_v2  ;;  %v329_v8 = vld [vmem:[%s266_s25 + $0x30] sm:$0xff]  ;;  %v330_v9 = vld [vmem:[%s266_s25 + $0x38] sm:$0xff]  ;;  %p1515_p6 = pnand %p1514_p13, %p2051_p5  ;;  %s1519_s29 = scalar_lea.vmem %s1518_s8, 1024 }
  0x80   : > { %v1337_v10 = vpack.c.bf16 %v330_v9, %v329_v8  ;;  %p1520_p12 = scmp.lt.s32.totalorder %s1937_s22, %s1518_s8  ;;  %p1521_p3 = scmp.lt.s32.totalorder %s1519_s29, %s1513_s7 }
  0x81   : > { %p1516_p9 = pneg %p1515_p6 }
  0x82   : > { %p1522_p8 = por %p1521_p3, %p1520_p12 }
  0x83   : > { %1260 = vmatmul.mubr.msk.f32.vlgmr.msra.gmra.mrb[0].mxu0 %vm331_vm1, %v311_v13 }
  0x84   : > { %1322 = vmatpush3.bf16.xpose.msk.msra.mxu0 %vm1872_vm2, %v1320_v14  ;;  %1267 = vmatmul.mubr.msk.f32.vlgmr.msra.gmra.mrb[0].mxu1 %vm331_vm1, %v312_v15  ;;  %p1523_p10 = pnand %p1522_p8, %p1516_p9 }
  0x85   : > { %1326 = vmatpush3.bf16.xpose.msk.msra.mxu1 %vm1872_vm2, %v1324_v16  ;;  %1273 = vmatprep.mubr.msk.f32.mxu0 %vm1623_vm0, %v1624_v1 }
  0x86   : > { %1280 = vmatprep.mubr.msk.f32.mxu1 %vm1623_vm0, %v1624_v1  ;;  %1327 = vmatprep.subr.bf16.mxu0 %v1622_v0 }
  0x87   : > { %1330 = vmatprep.subr.bf16.mxu1 %v1622_v0 }
  0x8b   : > { %1274 = vmatmul.mubr.msk.f32.vlgmr.msra.gmra.mrb[2].mxu0 %vm331_vm1, %v313_v17 }
  0x8c   : > { %1281 = vmatmul.mubr.msk.f32.vlgmr.msra.gmra.mrb[2].mxu1 %vm331_vm1, %v314_v18  ;;  %1287 = vmatprep.mubr.msk.f32.mxu0 %vm1623_vm0, %v1624_v1 }
  0x8d   : > { %1294 = vmatprep.mubr.msk.f32.mxu1 %vm1623_vm0, %v1624_v1  ;;  %1329 = vmatpush3.bf16.msra.mxu0 %v1328_v57 }
  0x8e   : > { %1333 = vmatprep.subr.bf16.mxu0 %v1622_v0  ;;  %1332 = vmatpush3.bf16.msra.mxu1 %v1331_v60 }
  0x8f   : > { %1336 = vmatprep.subr.bf16.mxu1 %v1622_v0 }
 0x156   : > { %v407_v19 = vpop.f32.mrb[0].mxu0 }
 0x157   : > { %v1261_v20 = vpop.f32.mrb[1].mxu0  ;;  %v649_v21 = vsel %vm648_vm3, %v407_v19, -inf  ;;  %v486_v22 = vpop.f32.mrb[0].mxu1 }
 0x158   : > { %650 = vmax.xlane.f32.xlu0 %v649_v21  ;;  %v1268_v23 = vpop.f32.mrb[1].mxu1  ;;  %v652_v24 = vsel %vm648_vm3, %v486_v22, -inf }
 0x15c   : > { %653 = vmax.xlane.f32.xlu0 %v652_v24 }
 0x15e   : > { %v565_v25 = vpop.f32.mrb[2].mxu0 }
 0x15f   : > { %v1275_v26 = vpop.f32.mrb[3].mxu0  ;;  %v655_v27 = vsel %vm648_vm3, %v565_v25, -inf  ;;  %v644_v28 = vpop.f32.mrb[2].mxu1 }
 0x160   : > { %656 = vmax.xlane.f32.xlu1 %v655_v27  ;;  %v1282_v29 = vpop.f32.mrb[3].mxu1  ;;  %v658_v30 = vsel %vm648_vm3, %v644_v28, -inf }
 0x164   : > { %659 = vmax.xlane.f32.xlu1 %v658_v30 }
 0x1e5   : > { %v651_v31 = vpop.xlane.xlu0 %650 }
 0x1e6   : > { %v661_v32 = vsub.f32 %v407_v19, %v651_v31 }
 0x1e8   : > { %v665_v33 = vmul.f32 0.17677669, %v661_v32 }
 0x1e9   : > { %v654_v34 = vpop.xlane.xlu0 %653 }
 0x1ea   : > { %v669_v35 = vmul.f32 1.442695, %v665_v33  ;;  %v662_v36 = vsub.f32 %v486_v22, %v654_v34 }
 0x1ec   : > { %1407 = vpow2.f32 %v669_v35  ;;  %v666_v37 = vmul.f32 0.17677669, %v662_v36 }
 0x1ed   : > { %v657_v38 = vpop.xlane.xlu1 %656 }
 0x1ee   : > { %v671_v39 = vmul.f32 1.442695, %v666_v37  ;;  %v663_v40 = vsub.f32 %v565_v25, %v657_v38 }
 0x1f0   : > { %1409 = vpow2.f32 %v671_v39  ;;  %v667_v41 = vmul.f32 0.17677669, %v663_v40 }
 0x1f1   : > { %v660_v42 = vpop.xlane.xlu1 %659 }
 0x1f2   : > { %v673_v43 = vmul.f32 1.442695, %v667_v41  ;;  %v664_v44 = vsub.f32 %v644_v28, %v660_v42 }
 0x1f4   : > { %1411 = vpow2.f32 %v673_v43  ;;  %v668_v45 = vmul.f32 0.17677669, %v664_v44 }
 0x1f6   : > { %v1408_v46 = vpop.eup %1407  ;;  %v675_v47 = vmul.f32 1.442695, %v668_v45 }
 0x1f7   : > { %v677_v48 = vsel %vm648_vm3, %v1408_v46, 0.0 }
 0x1f8   : > { %1413 = vpow2.f32 %v675_v47  ;;  %678 = vadd.xlane.f32.xlu0 %v677_v48 }
 0x1fa   : > { %v1410_v49 = vpop.eup %1409 }
 0x1fb   : > { %v680_v50 = vsel %vm648_vm3, %v1410_v49, 0.0 }
 0x1fc   : > { %681 = vadd.xlane.f32.xlu1 %v680_v50 }
 0x1fe   : > { %v1412_v51 = vpop.eup %1411 }
 0x1ff   : > { %v683_v52 = vsel %vm648_vm3, %v1412_v51, 0.0 }
 0x200   : > { %684 = vadd.xlane.f32.xlu0 %v683_v52 }
 0x202   : > { %v1414_v53 = vpop.eup %1413 }
 0x203   : > { %v686_v54 = vsel %vm648_vm3, %v1414_v53, 0.0 }
 0x204   : > { %687 = vadd.xlane.f32.xlu1 %v686_v54 }
 0x285   : > { %v679_v61 = vpop.xlane.xlu0 %678 }
 0x286   : > { %1415 = vrcp.f32 %v679_v61 }
 0x289   : > { %v682_v62 = vpop.xlane.xlu1 %681 }
 0x28a   : > { %1417 = vrcp.f32 %v682_v62 }
 0x28d   : > { %v685_v63 = vpop.xlane.xlu0 %684 }
 0x28e   : > { %1419 = vrcp.f32 %v685_v63 }
 0x290   : > { %v1416_v4 = vpop.eup %1415 }
 0x291   : > { %v693_v6 = vmul.f32 %v1416_v4, %v1408_v46  ;;  %v688_v7 = vpop.xlane.xlu1 %687 }
 0x292   : > { %1421 = vrcp.f32 %v688_v7 }
 0x293   : > { %993 = vst.msk [vmem:[%s305_s10] sm:$0xff] %vm648_vm3, %v693_v6  ;;  %1288 = vmatmul.mubr.msk.f32.vlgmr.msra.gmra.mrb[4].mxu0 %vm648_vm3, %v693_v6 }
 0x294   : > { %v1418_v0 = vpop.eup %1417  ;;  %1335 = vmatpush3.bf16.msra.mxu0 %v1334_v5  ;;  %1301 = vmatprep.mubr.msk.f32.mxu0 %vm1623_vm0, %v1624_v1 }
 0x295   : > { %v694_v11 = vmul.f32 %v1418_v0, %v1410_v49 }
 0x297   : > { %994 = vst.msk [vmem:[%s305_s10 + $0x8] sm:$0xff] %vm648_vm3, %v694_v11  ;;  %1295 = vmatmul.mubr.msk.f32.vlgmr.msra.gmra.mrb[4].mxu1 %vm648_vm3, %v694_v11 }
 0x298   : > { %v1420_v12 = vpop.eup %1419  ;;  %1338 = vmatpush3.bf16.msra.mxu1 %v1337_v10  ;;  %1308 = vmatprep.mubr.msk.f32.mxu1 %vm1623_vm0, %v1624_v1 }
 0x299   : > { %v695_v13 = vmul.f32 %v1420_v12, %v1412_v51 }
 0x29b   : > { %995 = vst.msk [vmem:[%s305_s10 + $0x10] sm:$0xff] %vm648_vm3, %v695_v13  ;;  %1302 = vmatmul.mubr.msk.f32.vlgmr.msra.gmra.mrb[6].mxu0 %vm648_vm3, %v695_v13 }
 0x29c   : > { %v1422_v14 = vpop.eup %1421 }
 0x29d   : > { %v696_v15 = vmul.f32 %v1422_v14, %v1414_v53 }
 0x29f   : > { %996 = vst.msk [vmem:[%s305_s10 + $0x18] sm:$0xff] %vm648_vm3, %v696_v15  ;;  %1309 = vmatmul.mubr.msk.f32.vlgmr.msra.gmra.mrb[6].mxu1 %vm648_vm3, %v696_v15 }
 0x2a0   : > { %1526 = shalt.err (!%p1523_p10)
}
 0x2a1   : > { %s1527_s11 = scalar_lea.hbm %s1935_s5, 512  ;;  %s1531_s30 = scalar_lea.hbm %s2029_s4, 1024 }
 0x2a2   : > { %p1528_p7 = scmp.ne.s32.totalorder %s1935_s5, %s1527_s11  ;;  %p1532_p4 = scmp.lt.u32.totalorder %s1935_s5, %s2029_s4 }
 0x2a3   : > { %p1533_p1 = scmp.lt.u32.totalorder %s1531_s30, %s1527_s11  ;;  %p1535_p13 = scmp.lt.u32.totalorder %s1527_s11, %s1935_s5 }
 0x2a4   : > { %p1529_p11 = pnand %p1528_p7, %p2051_p5 }
 0x2a5   : > { %p1534_p0 = por %p1533_p1, %p1532_p4 }
 0x2a6   : > { %p1530_p2 = pneg %p1529_p11 }
 0x2a7   : > { %p1536_p6 = por %p1535_p13, %p1534_p0 }
 0x2a9   : > { %p1537_p9 = pnand %p1536_p6, %p1530_p2 }
 0x2ab   : > { %1540 = shalt.err (!%p1537_p9)
}
 0x2ac   : > { %s1626_s10 = smov 128   ;;  %s1627_s13 = smov 8  }
 0x2ad   : > { %1346 = dma.vmem_to_hbm [thread:$0]  (%p2051_p5), %s1937_s22, 512, %s1935_s5, %s1003_s28, %s1626_s10, %s1626_s10, %s1627_s13  }
 0x2ae   : > { %s298_s23 = scalar_lea.vmem [#allocation8], %s1846_s1  ;;  %s1977_s1 = scalar_lea.hbm %s2028_s3, %s1229_s9 }
 0x2af   : > { %s1016_s7 = sshll.u32 %s298_s23, 4  ;;  %s998_s28 = scalar_lea.sflag [#allocation4], %s1843_s14  ;;  %s1970_s7 = int_to_ptr.vmem [resolvable:$true] %s1016_s7 }
 0x2b0   : > { %s1541_s6 = scalar_lea.vmem %s1970_s7, 512  ;;  %s1628_s8 = smov [#allocation8]  }
 0x2b1   : > { %p1542_p12 = scmp.ne.s32.totalorder %s1970_s7, %s1541_s6  ;;  %s1545_s19 = sshll.u32 %s1628_s8, 4  ;;  %s1546_s19 = int_to_ptr.vmem [resolvable:$false] %s1545_s19 }
 0x2b2   : > { %s1547_s29 = scalar_lea.vmem %s1546_s19, 1024  ;;  %p1548_p10 = scmp.lt.s32.totalorder %s1970_s7, %s1546_s19 }
 0x2b3   : > { %p1543_p3 = pnand %p1542_p12, %p2051_p5  ;;  %p1549_p7 = scmp.lt.s32.totalorder %s1547_s29, %s1541_s6 }
 0x2b5   : > { %p1544_p8 = pneg %p1543_p3  ;;  %p1550_p11 = por %p1549_p7, %p1548_p10 }
 0x2b7   : > { %p1551_p2 = pnand %p1550_p11, %p1544_p8 }
 0x366   : > { %v766_v1 = vpop.f32.mrb[4].mxu0 }
 0x367   : > { %989 = vst.msk [vmem:[%s298_s23] sm:$0xff] %vm331_vm1, %v766_v1  ;;  %v1289_v16 = vpop.f32.mrb[5].mxu0 }
 0x36a   : > { %v839_v17 = vpop.f32.mrb[4].mxu1 }
 0x36b   : > { %990 = vst.msk [vmem:[%s298_s23 + $0x8] sm:$0xff] %vm331_vm1, %v839_v17  ;;  %v1296_v18 = vpop.f32.mrb[5].mxu1 }
 0x36e   : > { %v912_v19 = vpop.f32.mrb[6].mxu0 }
 0x36f   : > { %991 = vst.msk [vmem:[%s298_s23 + $0x10] sm:$0xff] %vm331_vm1, %v912_v19  ;;  %v1303_v20 = vpop.f32.mrb[7].mxu0 }
 0x372   : > { %v985_v21 = vpop.f32.mrb[6].mxu1 }
 0x373   : > { %992 = vst.msk [vmem:[%s298_s23 + $0x18] sm:$0xff] %vm331_vm1, %v985_v21  ;;  %v1310_v22 = vpop.f32.mrb[7].mxu1 }
 0x374   : > { %1554 = shalt.err (!%p1551_p2)
}
 0x375   : > { %s1555_s9 = scalar_lea.hbm %s1977_s1, 512  ;;  %s1559_s12 = scalar_lea.hbm %s2028_s3, 1024 }
 0x376   : > { %p1556_p4 = scmp.ne.s32.totalorder %s1977_s1, %s1555_s9  ;;  %p1560_p13 = scmp.lt.u32.totalorder %s1977_s1, %s2028_s3 }
 0x377   : > { %p1561_p6 = scmp.lt.u32.totalorder %s1559_s12, %s1555_s9  ;;  %p1563_p12 = scmp.lt.u32.totalorder %s1555_s9, %s1977_s1 }
 0x378   : > { %p1557_p1 = pnand %p1556_p4, %p2051_p5 }
 0x379   : > { %p1562_p9 = por %p1561_p6, %p1560_p13 }
 0x37a   : > { %p1558_p0 = pneg %p1557_p1 }
 0x37b   : > { %p1564_p3 = por %p1563_p12, %p1562_p9 }
 0x37d   : > { %p1565_p8 = pnand %p1564_p3, %p1558_p0 }
 0x37f   : > { %1568 = shalt.err (!%p1565_p8)
}
 0x380   : > { %1345 = dma.vmem_to_hbm [thread:$0]  (%p2051_p5), %s1970_s7, 512, %s1977_s1, %s998_s28, %s1626_s10, %s1626_s10, %s1627_s13  }
 0x381 PF: > { %s1047_s25 = sand.u32 1, %s1603_s15   ;;  %p2052_p10 = scmp.ne.s32.totalorder %s2040_s27, 0 }
 0x382   : > { %p2053_p7 = scmp.ge.s32.totalorder %s1615_s18, 2  ;;  %s1048_s23 = scalar_lea.sflag [#allocation4], %s1047_s25 }
 0x384   : > { %p1360_p11 = pnand %p2053_p7, %p2052_p10 }
 0x386   : > { %1594 = dma.done.wait (!%p1360_p11), %s1048_s23, 512  }
 0x387   : > { %1596 = vsyncadd (!%p1360_p11), %s1048_s23, 4294966784  ;;  %s1057_s26 = scalar_lea.sflag [#allocation10], %s1047_s25 }
 0x388   : > { %1598 = dma.done.wait (!%p1360_p11), %s1057_s26, 512  }
 0x389   : > { %1600 = vsyncadd (!%p1360_p11), %s1057_s26, 4294966784  ;;  %s2054_s14 = sld [smem:[#allocation15_spill]]  ;;  %p24_p5 = scmp.ge.s32.totalorder %s1679_s21, 4  }
 0x38a   : > { %s2055_s15 = smov %s1607_s16  ;;  %s2056_s16 = smov %s1611_s17 }
 0x38b   : > { %s2058_s18 = smov %s1679_s21  ;;  %26 = sbr.rel (!%p24_p5) target bundleno = 11 (0xb), region = 118 }
 0x38f   : > { %s2057_s17 = smov %s2054_s14 }
 0x392   :  { %1062 = vsyncpa [#allocation3], 1 }
 0x393   :  { %1064 = vsyncpa [#allocation3 + $0x1], 1 }
 0x394   :  { %1065 = vsyncpa [#allocation6], 1 }
 0x395   :  { %1067 = vsyncpa [#allocation6 + $0x1], 1 }
 0x396   :  { %1068 = vsyncpa [#allocation4], 1 }
 0x397   :  { %1070 = vsyncpa [#allocation4 + $0x1], 1 }
 0x398   :  { %1071 = vsyncpa [#allocation10], 1 }
 0x399   :  { %1073 = vsyncpa [#allocation10 + $0x1], 1 }

</bundles_post_ra>
